<compile_context>
chip_gen: v5e
topology: v5e:2x2
jax: 0.10.0
libtpu: 0.0.40
codegen_flags: <defaults>
</compile_context>

<pallas_src>
import jax
import jax.numpy as jnp
from jax.experimental import pallas as pl
from jax.experimental.pallas import tpu as pltpu

_SENTINEL = 1e9          # padded points: exp(-(x - 1e9)^2 / (2 l^2)) == 0 exactly (f32)
_VMEM_LIMIT = 32 * 1024 * 1024


def _round_up(n, m):
    return ((n + m - 1) // m) * m


# ---------------------------------------------------------------------------
# Kernel 1: tiled RBF matrix (only for Kxx, which must be materialized because
# the matrix inverse is done outside Pallas).
# ---------------------------------------------------------------------------
def _rbf_tile_kernel(params_ref, x1_ref, x2_ref, out_ref):
    d = x1_ref[...] - x2_ref[...]                      # (tm,1)-(1,tn) -> (tm,tn)
    out_ref[...] = params_ref[0] * jnp.exp(d * d * params_ref[1])


def rbf_matrix(x1_pad, x2_pad, params, *, tm=512, tn=512):
    Np, Mp = x1_pad.shape[0], x2_pad.shape[0]
    return pl.pallas_call(
        _rbf_tile_kernel,
        out_shape=jax.ShapeDtypeStruct((Np, Mp), jnp.float32),
        grid=(Np // tm, Mp // tn),
        in_specs=[
            pl.BlockSpec(memory_space=pltpu.MemorySpace.SMEM),   # [sig^2, -0.5/l^2]
            pl.BlockSpec((tm, 1), lambda i, j: (i, 0)),
            pl.BlockSpec((1, tn), lambda i, j: (0, j)),
        ],
        out_specs=pl.BlockSpec((tm, tn), lambda i, j: (i, j)),
        compiler_params=pltpu.CompilerParams(
            dimension_semantics=("parallel", "parallel"),
            vmem_limit_bytes=_VMEM_LIMIT),
    )(params, x1_pad.reshape(Np, 1), x2_pad.reshape(1, Mp))


# ---------------------------------------------------------------------------
# Kernel 2: W = Kxx^{-1} @ K1, K1 tiles generated on the fly.
# bf16 MXU operands, f32 accumulation directly into the resident output block,
# sig^2 applied once per output tile in the epilogue.
# ---------------------------------------------------------------------------
def _w_kernel(params_ref, linv_ref, x_ref, xt_ref, w_ref):
    k = pl.program_id(2)

    @pl.when(k == 0)
    def _():
        w_ref[...] = jnp.zeros_like(w_ref)

    d = x_ref[...] - xt_ref[...]                       # f32 (tk,1)-(1,tn) -> (tk,tn)
    e_tile = jnp.exp(d * d * params_ref[1])            # exp part of K1, in [0,1], f32
    w_ref[...] += jnp.dot(linv_ref[...],               # already bf16
                          e_tile.astype(jnp.bfloat16),
                          preferred_element_type=jnp.float32)

    @pl.when(k == pl.num_programs(2) - 1)
    def _():
        w_ref[...] = w_ref[...] * params_ref[0]        # fold sig^2 once per tile


def gp_w(linv_pad_bf16, x_pad, xt_pad, params, *, tm=512, tn=512, tk=512):
    Np, Mp = x_pad.shape[0], xt_pad.shape[0]
    return pl.pallas_call(
        _w_kernel,
        out_shape=jax.ShapeDtypeStruct((Np, Mp), jnp.float32),
        grid=(Np // tm, Mp // tn, Np // tk),
        in_specs=[
            pl.BlockSpec(memory_space=pltpu.MemorySpace.SMEM),
            pl.BlockSpec((tm, tk), lambda i, j, k: (i, k)),   # Kxx^{-1} (bf16)
            pl.BlockSpec((tk, 1), lambda i, j, k: (k, 0)),    # X      (column)
            pl.BlockSpec((1, tn), lambda i, j, k: (0, j)),    # X_test (row)
        ],
        out_specs=pl.BlockSpec((tm, tn), lambda i, j, k: (i, j)),
        compiler_params=pltpu.CompilerParams(
            dimension_semantics=("parallel", "parallel", "arbitrary"),
            vmem_limit_bytes=_VMEM_LIMIT),
    )(params, linv_pad_bf16, x_pad.reshape(Np, 1), xt_pad.reshape(1, Mp))


# ---------------------------------------------------------------------------
# Kernel 3: Sig = K3 - K1^T @ W, computed only for upper-triangular output-tile
# pairs (i <= j) selected through scalar-prefetched index arrays; K1^T and K3
# tiles generated on the fly (no transpose), bf16 MXU operands, f32 output
# block used as the accumulator.
# ---------------------------------------------------------------------------
def _sig_kernel(ii_ref, jj_ref, params_ref, xt_col_ref, x_row_ref, xt_row_ref,
                w_ref, sig_ref):
    del ii_ref, jj_ref                                   # only used by index_maps
    k = pl.program_id(1)

    @pl.when(k == 0)
    def _():
        sig_ref[...] = jnp.zeros_like(sig_ref)

    d = xt_col_ref[...] - x_row_ref[...]                 # (tm,1)-(1,tk) -> (tm,tk)
    e1t_tile = jnp.exp(d * d * params_ref[1])            # exp part of K1^T tile, f32
    sig_ref[...] += jnp.dot(e1t_tile.astype(jnp.bfloat16),
                            w_ref[...].astype(jnp.bfloat16),
                            preferred_element_type=jnp.float32)

    @pl.when(k == pl.num_programs(1) - 1)
    def _():
        d3 = xt_col_ref[...] - xt_row_ref[...]           # (tm,1)-(1,tm) -> (tm,tm)
        e3_tile = jnp.exp(d3 * d3 * params_ref[1])
        sig_ref[...] = params_ref[0] * (e3_tile - sig_ref[...])


def gp_covariance_sym(w_pad, x_pad, xt_pad, params, *, tm=512, tk=512):
    Np, Mp = x_pad.shape[0], xt_pad.shape[0]
    nb = Mp // tm
    iu, ju = [], []
    for i in range(nb):
        for j in range(i, nb):
            iu.append(i)
            ju.append(j)
    ii = jnp.asarray(iu, dtype=jnp.int32)
    jj = jnp.asarray(ju, dtype=jnp.int32)
    num_pairs = len(iu)

    # The pair axis writes distinct output tiles, so it is semantically
    # parallel; it is kept "arbitrary" because its output index_map is
    # data-dependent (scalar-prefetched), which is the conservative choice.
    return pl.pallas_call(
        _sig_kernel,
        out_shape=jax.ShapeDtypeStruct((Mp, Mp), jnp.float32),
        grid_spec=pltpu.PrefetchScalarGridSpec(
            num_scalar_prefetch=2,
            grid=(num_pairs, Np // tk),
            in_specs=[
                pl.BlockSpec(memory_space=pltpu.MemorySpace.SMEM),            # params
                pl.BlockSpec((tm, 1), lambda p, k, ii, jj: (ii[p], 0)),       # X_test col
                pl.BlockSpec((1, tk), lambda p, k, ii, jj: (0, k)),           # X row
                pl.BlockSpec((1, tm), lambda p, k, ii, jj: (0, jj[p])),       # X_test row
                pl.BlockSpec((tk, tm), lambda p, k, ii, jj: (k, jj[p])),      # W
            ],
            out_specs=pl.BlockSpec((tm, tm), lambda p, k, ii, jj: (ii[p], jj[p])),
        ),
        compiler_params=pltpu.CompilerParams(
            dimension_semantics=("arbitrary", "arbitrary"),
            vmem_limit_bytes=_VMEM_LIMIT),
    )(ii, jj, params, xt_pad.reshape(Mp, 1), x_pad.reshape(1, Np),
      xt_pad.reshape(1, Mp), w_pad)


# ---------------------------------------------------------------------------
# Forward pass: mirrors exact_GP.forward -> (mu, Sig)
# ---------------------------------------------------------------------------
def exact_gp_forward(X, y, X_test, l, sig, sig_n, *, tile=512):
    X = jnp.reshape(X, (-1,)).astype(jnp.float32)
    y = jnp.reshape(y, (-1, 1)).astype(jnp.float32)
    X_test = jnp.reshape(X_test, (-1,)).astype(jnp.float32)
    N, M = X.shape[0], X_test.shape[0]

    l = jnp.float32(l)
    sig = jnp.float32(sig)
    sig_n = jnp.float32(sig_n)
    s2 = sig * sig
    negc = jnp.float32(-0.5) / (l * l)
    params = jnp.stack([s2, negc]).astype(jnp.float32)

    # Tile sizes: default 512 (amortizes the ~0.35us grid-step overhead and
    # keeps the fused exp hidden under the bf16 MXU), shrunk in 256-steps for
    # tiny problems so padding stays small.  256|512 are multiples of both the
    # v6e/v7x 256-wide and the v5e 128-wide MXU.
    tile_n = min(tile, _round_up(N, 256))
    tile_m = min(tile, _round_up(M, 256))
    Np = _round_up(N, tile_n)
    Mp = _round_up(M, tile_m)

    x_pad = jnp.full((Np,), _SENTINEL, dtype=jnp.float32).at[:N].set(X)
    xt_pad = jnp.full((Mp,), _SENTINEL, dtype=jnp.float32).at[:M].set(X_test)

    # Kxx (materialized only because the inverse needs it) + noise jitter.
    Kxx = rbf_matrix(x_pad, x_pad, params, tm=tile_n, tn=tile_n)[:N, :N]
    Kxx = Kxx + jnp.eye(N, dtype=jnp.float32) * (sig_n ** 2)

    # TODO(synk): torch.linalg.inv has no Pallas TPU primitive; the inverse is
    # done in plain JAX (a Cholesky solve would be more stable but would change
    # the module's semantics).
    Linv = jnp.linalg.inv(Kxx)

    # Linv stored in bf16: halves its HBM traffic and feeds the MXU natively.
    linv_pad = jnp.zeros((Np, Np), jnp.bfloat16).at[:N, :N].set(
        Linv.astype(jnp.bfloat16))

    # W = Kxx^{-1} K1  (f32 output, bf16 MXU operands)
    W_pad = gp_w(linv_pad, x_pad, xt_pad, params,
                 tm=tile_n, tn=tile_m, tk=tile_n)

    # mu = K1^T Linv y = W^T y (Linv symmetric) — tiny plain-JAX matvec,
    # replaces the former dedicated gp_mean kernel.
    y_pad = jnp.zeros((Np, 1), jnp.float32).at[:N].set(y)
    mu = (W_pad.T @ y_pad)[:M]

    # Sig: only upper-triangular output tiles are computed; mirror elementwise
    # (valid because tm == tn, so the elementwise upper triangle lies entirely
    # in computed tiles; never-visited lower tiles are masked out by triu).
    Sig_upper = gp_covariance_sym(W_pad, x_pad, xt_pad, params,
                                  tm=tile_m, tk=tile_n)
    Sig_pad = jnp.triu(Sig_upper) + jnp.triu(Sig_upper, 1).T
    Sig = Sig_pad[:M, :M]
    return mu, Sig


if __name__ == "__main__":
    # Deterministic parameters as in exact_GP.__init__
    l = jnp.float32(0.1)
    sig = jnp.float32(1.0)
    sig_n = jnp.float32(0.1)

    # Small deterministic data: N=8 training points, M=16 test points.
    # X is evenly spread so Kxx stays well-conditioned under jnp.linalg.inv.
    N, M = 8, 16
    X = jnp.linspace(0.0, 1.0, N, dtype=jnp.float32)
    X_test = jnp.linspace(-0.1, 1.1, M, dtype=jnp.float32)
    y = jax.random.normal(jax.random.PRNGKey(0), (N,), dtype=jnp.float32)

    mu, Sig = exact_gp_forward(X, y, X_test, l, sig, sig_n)
    jax.block_until_ready((mu, Sig))
    assert mu.shape == (M, 1) and Sig.shape == (M, M)

    # ---- references -------------------------------------------------------
    s2 = sig * sig
    negc = jnp.float32(-0.5) / (l * l)

    def exp_mat(a, b):
        d = a.reshape(-1, 1) - b.reshape(1, -1)
        return jnp.exp(d * d * negc)

    E1 = exp_mat(X, X_test)
    Exx = exp_mat(X, X)
    E3 = exp_mat(X_test, X_test)
    yc = y.reshape(-1, 1)
    Kxxr = s2 * Exx + jnp.eye(N, dtype=jnp.float32) * sig_n ** 2
    Lr = jnp.linalg.inv(Kxxr)

    # (a) precision-matched reference: same math with MXU operands cast to
    #     bf16 + f32 accumulation, exactly as the kernels do.
    Wm = s2 * jnp.dot(Lr.astype(jnp.bfloat16), E1.astype(jnp.bfloat16),
                      preferred_element_type=jnp.float32)
    mu_m = Wm.T @ yc
    Sig_m = s2 * (E3 - jnp.dot(E1.T.astype(jnp.bfloat16), Wm.astype(jnp.bfloat16),
                               preferred_element_type=jnp.float32))
    assert jnp.allclose(mu, mu_m, atol=2e-2), "mu mismatch (bf16-matched ref)"
    assert jnp.allclose(Sig, Sig_m, atol=2e-2), "Sig mismatch (bf16-matched ref)"

    # (b) exact module semantics in f32 (tolerance reflects bf16 MXU operands).
    K1r = s2 * E1
    K3r = s2 * E3
    mur = K1r.T @ (Lr @ yc)
    Sigr = K3r - K1r.T @ (Lr @ K1r)
    assert jnp.allclose(mu, mur, atol=1.5e-1), "mu mismatch (f32 ref)"
    assert jnp.allclose(Sig, Sigr, atol=1.5e-1), "Sig mismatch (f32 ref)"

    print("KERNEL_OK")
</pallas_src>

<mosaic_0001>
module attributes {stable_mosaic.version = 11 : i64} {
  func.func @_rbf_tile_kernel(%arg0: i32, %arg1: i32, %arg2: memref<2xf32, #tpu.memory_space<smem>>, %arg3: memref<256x1xf32, #tpu.memory_space<vmem>>, %arg4: memref<1x256xf32, #tpu.memory_space<vmem>>, %arg5: memref<256x256xf32, #tpu.memory_space<vmem>>) attributes {dimension_semantics = [#tpu.dimension_semantics<parallel>, #tpu.dimension_semantics<parallel>], iteration_bounds = array<i64: 1, 1>, scalar_prefetch = 0 : i64, scratch_operands = 0 : i64, tpu.core_type = #tpu.core_type<tc>, window_params = [{transform_indices = @transform_0, window_bounds = array<i64: 2>}, {transform_indices = @transform_1, window_bounds = array<i64: 256, 1>}, {transform_indices = @transform_2, window_bounds = array<i64: 1, 256>}, {transform_indices = @transform_3, window_bounds = array<i64: 256, 256>}]} {
    %c0 = arith.constant 0 : index
    %c0_0 = arith.constant 0 : index
    %0 = vector.load %arg3[%c0, %c0_0] : memref<256x1xf32, #tpu.memory_space<vmem>>, vector<256x1xf32>
    %c0_1 = arith.constant 0 : index
    %c0_2 = arith.constant 0 : index
    %1 = vector.load %arg4[%c0_1, %c0_2] : memref<1x256xf32, #tpu.memory_space<vmem>>, vector<1x256xf32>
    %2 = vector.broadcast %0 : vector<256x1xf32> to vector<256x256xf32>
    %3 = vector.broadcast %1 : vector<1x256xf32> to vector<256x256xf32>
    %4 = arith.subf %2, %3 : vector<256x256xf32>
    %c0_3 = arith.constant 0 : index
    %5 = memref.load %arg2[%c0_3] : memref<2xf32, #tpu.memory_space<smem>>
    %6 = arith.mulf %4, %4 : vector<256x256xf32>
    %c1 = arith.constant 1 : index
    %7 = memref.load %arg2[%c1] : memref<2xf32, #tpu.memory_space<smem>>
    %8 = vector.broadcast %7 : f32 to vector<256x256xf32>
    %9 = arith.mulf %6, %8 : vector<256x256xf32>
    %10 = math.exp %9 : vector<256x256xf32>
    %11 = vector.broadcast %5 : f32 to vector<256x256xf32>
    %12 = arith.mulf %11, %10 : vector<256x256xf32>
    %c0_4 = arith.constant 0 : index
    %c0_5 = arith.constant 0 : index
    %13 = vector.load %arg5[%c0_4, %c0_5] : memref<256x256xf32, #tpu.memory_space<vmem>>, vector<256x256xf32>
    tpu.vector_store %arg5[%c0_4, %c0_5], %12 {strides = array<i32>} : memref<256x256xf32, #tpu.memory_space<vmem>>, vector<256x256xf32>,
    return
  }
  func.func @transform_0(%arg0: i32, %arg1: i32) -> i32 {
    %c0_i32 = arith.constant 0 : i32
    %c0_i32_0 = arith.constant 0 : i32
    return %c0_i32 : i32
  }
  func.func @transform_1(%arg0: i32, %arg1: i32) -> (i32, i32) {
    %c0_i32 = arith.constant 0 : i32
    %c0_i32_0 = arith.constant 0 : i32
    return %arg0, %c0_i32 : i32, i32
  }
  func.func @transform_2(%arg0: i32, %arg1: i32) -> (i32, i32) {
    %c0_i32 = arith.constant 0 : i32
    %c0_i32_0 = arith.constant 0 : i32
    return %c0_i32, %arg1 : i32, i32
  }
  func.func @transform_3(%arg0: i32, %arg1: i32) -> (i32, i32) {
    %c0_i32 = arith.constant 0 : i32
    return %arg0, %arg1 : i32, i32
  }
}

</mosaic_0001>

<bundles_post_ra>
// kernel: tpu_custom_call.1
= control target key start
LH: loop header
LB: loop body
LE: loop exit
PB: predicated region body
PF: predicated region fallthrough
CT: control target
= control target key end

     0   :  { %8 = vsyncpa [#allocation4], 0  ;;  %s1204_s0 = inlined_call_operand.vmem [shape: f32[2], index: 0, kind: input, shape index: {}]   ;;  %s1205_s1 = inlined_call_operand.vmem [shape: f32[256,1], index: 1, kind: input, shape index: {}]   ;;  %s1206_s2 = inlined_call_operand.vmem [shape: f32[1,256], index: 2, kind: input, shape index: {}]   ;;  %s1207_s3 = inlined_call_operand.hbm [shape: f32[256,256], index: 3, kind: output, shape index: {}]  }
   0x1   :  { %9 = vsyncpa [#allocation3], 0  ;;  %s15_s14 = sshll.u32 %s1204_s0, 4  ;;  %s874_s15 = smov [#allocation2]   ;;  %s16_s14 = int_to_ptr.vmem [resolvable:$true] %s15_s14 }
   0x2   :  { %18 = dma.vmem_to_smem %s16_s14, 16, %s874_s15, [#allocation4]  }
   0x3   :  { %870 = dma.done.wait [#allocation4], 16  }
   0x4   :  { %871 = vsyncadd [#allocation4], 4294967280 }
   0x5   :  { %27 = sfence }
   0x6   :  { %v32_v0 = vld [vmem:[%s1205_s1 + $0x20] sm:$0xff]  ;;  %v30_v1 = vld [vmem:[%s1205_s1 + $0x10] sm:$0xff]  ;;  %v875_v3 = vmov 0   ;;  %v33_v4 = vld [vmem:[%s1205_s1 + $0x28] sm:$0xff]  ;;  %s697_s25 = sld [smem:[#allocation2 + $0x1]]  ;;  %s684_s29 = sshll.u32 %s1207_s3, 4  ;;  %s685_s29 = int_to_ptr.hbm [resolvable:$true] %s684_s29 }
   0x7   :  { %v28_v2 = vld [vmem:[%s1205_s1] sm:$0xff]  ;;  %705 = vset.pattern.permute.xlu2 %v875_v3  ;;  %704 = vset.pattern.permute.xlu1 %v875_v3  ;;  %v31_v5 = vld [vmem:[%s1205_s1 + $0x18] sm:$0xff]  ;;  %v29_v6 = vld [vmem:[%s1205_s1 + $0x8] sm:$0xff]  ;;  %s877_s30 = smov 256   ;;  %s878_s4 = smov 16  }
   0x8   :  { %703 = vset.pattern.permute.xlu0 %v875_v3  ;;  %83 = vperm.xlu2 %705, %v32_v0   ;;  %v36_v7 = vld [vmem:[%s1205_s1 + $0x40] sm:$0xff]  ;;  %v35_v8 = vld [vmem:[%s1205_s1 + $0x38] sm:$0xff]  ;;  %v34_v9 = vld [vmem:[%s1205_s1 + $0x30] sm:$0xff] }
   0x9   :  { %73 = vperm.xlu1 %704, %v30_v1   ;;  %63 = vperm.xlu0 %703, %v28_v2   ;;  %v39_v10 = vld [vmem:[%s1205_s1 + $0x58] sm:$0xff]  ;;  %v38_v11 = vld [vmem:[%s1205_s1 + $0x50] sm:$0xff]  ;;  %v37_v12 = vld [vmem:[%s1205_s1 + $0x48] sm:$0xff] }
   0xa   :  { %v42_v13 = vld [vmem:[%s1205_s1 + $0x70] sm:$0xff]  ;;  %v41_v14 = vld [vmem:[%s1205_s1 + $0x68] sm:$0xff]  ;;  %v40_v15 = vld [vmem:[%s1205_s1 + $0x60] sm:$0xff] }
   0xb   :  { %v45_v16 = vld [vmem:[%s1205_s1 + $0x88] sm:$0xff]  ;;  %v44_v17 = vld [vmem:[%s1205_s1 + $0x80] sm:$0xff]  ;;  %v43_v18 = vld [vmem:[%s1205_s1 + $0x78] sm:$0xff] }
   0xc   :  { %v48_v19 = vld [vmem:[%s1205_s1 + $0xa0] sm:$0xff]  ;;  %v47_v20 = vld [vmem:[%s1205_s1 + $0x98] sm:$0xff]  ;;  %v46_v21 = vld [vmem:[%s1205_s1 + $0x90] sm:$0xff]  ;;  %v1007_v41 = vstv %s697_s25 }
   0xd   :  { %v51_v22 = vld [vmem:[%s1205_s1 + $0xb8] sm:$0xff]  ;;  %v50_v23 = vld [vmem:[%s1205_s1 + $0xb0] sm:$0xff]  ;;  %v49_v24 = vld [vmem:[%s1205_s1 + $0xa8] sm:$0xff] }
   0xe   :  { %v54_v25 = vld [vmem:[%s1205_s1 + $0xd0] sm:$0xff]  ;;  %v53_v26 = vld [vmem:[%s1205_s1 + $0xc8] sm:$0xff]  ;;  %v52_v27 = vld [vmem:[%s1205_s1 + $0xc0] sm:$0xff] }
   0xf   :  { %v57_v28 = vld [vmem:[%s1205_s1 + $0xe8] sm:$0xff]  ;;  %v56_v29 = vld [vmem:[%s1205_s1 + $0xe0] sm:$0xff]  ;;  %v55_v30 = vld [vmem:[%s1205_s1 + $0xd8] sm:$0xff] }
  0x10   :  { %88 = vperm.xlu2 %705, %v33_v4   ;;  %v59_v31 = vld [vmem:[%s1205_s1 + $0xf8] sm:$0xff]  ;;  %v58_v32 = vld [vmem:[%s1205_s1 + $0xf0] sm:$0xff]  ;;  %v60_v33 = vld [vmem:[%s1206_s2] sm:$0x3]  ;;  %s290_s1 = sld [smem:[#allocation2]]  ;;  %s876_s2 = smov [#allocation5]  }
  0x11   :  { %78 = vperm.xlu1 %704, %v31_v5   ;;  %68 = vperm.xlu0 %703, %v29_v6   ;;  %v1001_v34 = vperm.slane %v60_v33, 0  ;;  %v1003_v35 = vperm.slane %v60_v33, 1  ;;  %s682_s26 = sshll.u32 %s876_s2, 4  ;;  %s683_s26 = int_to_ptr.vmem [resolvable:$true] %s682_s26 }
  0x16   :  { %v1015_v54 = vstv %s290_s1 }
  0x18   :  { %103 = vperm.xlu2 %705, %v36_v7  }
  0x19   :  { %98 = vperm.xlu1 %704, %v35_v8   ;;  %93 = vperm.xlu0 %703, %v34_v9  }
  0x20   :  { %118 = vperm.xlu2 %705, %v39_v10  }
  0x21   :  { %113 = vperm.xlu1 %704, %v38_v11   ;;  %108 = vperm.xlu0 %703, %v37_v12  }
  0x28   :  { %133 = vperm.xlu2 %705, %v42_v13  }
  0x29   :  { %128 = vperm.xlu1 %704, %v41_v14   ;;  %123 = vperm.xlu0 %703, %v40_v15  }
  0x30   :  { %148 = vperm.xlu2 %705, %v45_v16  }
  0x31   :  { %143 = vperm.xlu1 %704, %v44_v17   ;;  %138 = vperm.xlu0 %703, %v43_v18  }
  0x38   :  { %163 = vperm.xlu2 %705, %v48_v19  }
  0x39   :  { %158 = vperm.xlu1 %704, %v47_v20   ;;  %153 = vperm.xlu0 %703, %v46_v21  }
  0x40   :  { %178 = vperm.xlu2 %705, %v51_v22  }
  0x41   :  { %173 = vperm.xlu1 %704, %v50_v23   ;;  %168 = vperm.xlu0 %703, %v49_v24  }
  0x48   :  { %193 = vperm.xlu2 %705, %v54_v25  }
  0x49   :  { %188 = vperm.xlu1 %704, %v53_v26   ;;  %183 = vperm.xlu0 %703, %v52_v27  }
  0x50   :  { %208 = vperm.xlu2 %705, %v57_v28  }
  0x51   :  { %203 = vperm.xlu1 %704, %v56_v29   ;;  %198 = vperm.xlu0 %703, %v55_v30  }
  0x59   :  { %218 = vperm.xlu1 %704, %v59_v31   ;;  %213 = vperm.xlu0 %703, %v58_v32  }
  0x62   :  { %v84_v36 = vpop.permute.xlu2 %83 }
  0x63   :  { %v234_v37 = vsub.f32 %v84_v36, %v1001_v34  ;;  %v235_v38 = vsub.f32 %v84_v36, %v1003_v35 }
  0x65   :  { %v299_v39 = vmul.f32 %v234_v37, %v234_v37  ;;  %v300_v40 = vmul.f32 %v235_v38, %v235_v38 }
  0x67   :  { %v365_v42 = vmul.f32 %v1007_v41, %v299_v39  ;;  %v366_v43 = vmul.f32 %v1007_v41, %v300_v40 }
  0x69   :  { %v437_v44 = vmul.f32 1.442695, %v365_v42  ;;  %v439_v45 = vmul.f32 1.442695, %v366_v43 }
  0x6a   :  { %v89_v46 = vpop.permute.xlu2 %88 }
  0x6b   :  { %706 = vpow2.f32 %v437_v44  ;;  %v236_v47 = vsub.f32 %v89_v46, %v1001_v34  ;;  %v237_v48 = vsub.f32 %v89_v46, %v1003_v35 }
  0x6c   :  { %708 = vpow2.f32 %v439_v45 }
  0x6d   :  { %v301_v49 = vmul.f32 %v236_v47, %v236_v47  ;;  %v302_v50 = vmul.f32 %v237_v48, %v237_v48 }
  0x6f   :  { %v367_v51 = vmul.f32 %v1007_v41, %v301_v49  ;;  %v368_v52 = vmul.f32 %v1007_v41, %v302_v50 }
  0x71   :  { %v707_v53 = vpop.eup %706  ;;  %v441_v55 = vmul.f32 1.442695, %v367_v51  ;;  %v443_v56 = vmul.f32 1.442695, %v368_v52 }
  0x72   :  { %v709_v57 = vpop.eup %708  ;;  %v558_v58 = vmul.f32 %v707_v53, %v1015_v54  ;;  %v104_v59 = vpop.permute.xlu2 %103 }
  0x73   :  { %v559_v60 = vmul.f32 %v709_v57, %v1015_v54  ;;  %710 = vpow2.f32 %v441_v55  ;;  %v242_v61 = vsub.f32 %v104_v59, %v1001_v34  ;;  %v243_v62 = vsub.f32 %v104_v59, %v1003_v35 }
  0x74   :  { %622 = vst [vmem:[#allocation5 + $0x40] sm:$0xff] %v558_v58  ;;  %712 = vpow2.f32 %v443_v56 }
  0x75   :  { %623 = vst [vmem:[#allocation5 + $0x48] sm:$0xff] %v559_v60  ;;  %v307_v63 = vmul.f32 %v242_v61, %v242_v61  ;;  %v308_v0 = vmul.f32 %v243_v62, %v243_v62 }
  0x77   :  { %v373_v1 = vmul.f32 %v1007_v41, %v307_v63  ;;  %v374_v2 = vmul.f32 %v1007_v41, %v308_v0 }
  0x79   :  { %v711_v3 = vpop.eup %710  ;;  %v453_v4 = vmul.f32 1.442695, %v373_v1  ;;  %v455_v5 = vmul.f32 1.442695, %v374_v2 }
  0x7a   :  { %v713_v6 = vpop.eup %712  ;;  %v560_v7 = vmul.f32 %v711_v3, %v1015_v54  ;;  %v119_v8 = vpop.permute.xlu2 %118 }
  0x7b   :  { %v561_v9 = vmul.f32 %v713_v6, %v1015_v54  ;;  %714 = vpow2.f32 %v453_v4  ;;  %v248_v10 = vsub.f32 %v119_v8, %v1001_v34  ;;  %v249_v11 = vsub.f32 %v119_v8, %v1003_v35  ;;  %v74_v12 = vpop.permute.xlu1 %73  ;;  %v64_v13 = vpop.permute.xlu0 %63 }
  0x7c   :  { %624 = vst [vmem:[#allocation5 + $0x50] sm:$0xff] %v560_v7  ;;  %716 = vpow2.f32 %v455_v5  ;;  %v230_v14 = vsub.f32 %v74_v12, %v1001_v34  ;;  %v231_v15 = vsub.f32 %v74_v12, %v1003_v35  ;;  %v226_v16 = vsub.f32 %v64_v13, %v1001_v34 }
  0x7d   :  { %625 = vst [vmem:[#allocation5 + $0x58] sm:$0xff] %v561_v9  ;;  %v313_v17 = vmul.f32 %v248_v10, %v248_v10  ;;  %v314_v18 = vmul.f32 %v249_v11, %v249_v11  ;;  %v227_v19 = vsub.f32 %v64_v13, %v1003_v35 }
  0x7e   :  { %v295_v20 = vmul.f32 %v230_v14, %v230_v14  ;;  %v296_v21 = vmul.f32 %v231_v15, %v231_v15  ;;  %v291_v22 = vmul.f32 %v226_v16, %v226_v16 }
  0x7f   :  { %v379_v23 = vmul.f32 %v1007_v41, %v313_v17  ;;  %v380_v24 = vmul.f32 %v1007_v41, %v314_v18  ;;  %v292_v25 = vmul.f32 %v227_v19, %v227_v19 }
  0x80   :  { %v361_v26 = vmul.f32 %v1007_v41, %v295_v20  ;;  %v362_v27 = vmul.f32 %v1007_v41, %v296_v21  ;;  %v357_v28 = vmul.f32 %v1007_v41, %v291_v22 }
  0x81   :  { %v715_v29 = vpop.eup %714  ;;  %v465_v30 = vmul.f32 1.442695, %v379_v23  ;;  %v467_v31 = vmul.f32 1.442695, %v380_v24  ;;  %v358_v32 = vmul.f32 %v1007_v41, %v292_v25 }
  0x82   :  { %v717_v33 = vpop.eup %716  ;;  %v566_v36 = vmul.f32 %v715_v29, %v1015_v54  ;;  %v429_v37 = vmul.f32 1.442695, %v361_v26  ;;  %v431_v38 = vmul.f32 1.442695, %v362_v27  ;;  %v421_v39 = vmul.f32 1.442695, %v357_v28  ;;  %v134_v40 = vpop.permute.xlu2 %133 }
  0x83   :  { %v567_v42 = vmul.f32 %v717_v33, %v1015_v54  ;;  %718 = vpow2.f32 %v465_v30  ;;  %v423_v43 = vmul.f32 1.442695, %v358_v32  ;;  %v254_v44 = vsub.f32 %v134_v40, %v1001_v34  ;;  %v79_v45 = vpop.permute.xlu1 %78  ;;  %v69_v46 = vpop.permute.xlu0 %68 }
  0x84   :  { %630 = vst [vmem:[#allocation5 + $0x80] sm:$0xff] %v566_v36  ;;  %720 = vpow2.f32 %v467_v31  ;;  %v255_v47 = vsub.f32 %v134_v40, %v1003_v35  ;;  %v232_v48 = vsub.f32 %v79_v45, %v1001_v34  ;;  %v233_v49 = vsub.f32 %v79_v45, %v1003_v35 }
  0x85   :  { %631 = vst [vmem:[#allocation5 + $0x88] sm:$0xff] %v567_v42  ;;  %722 = vpow2.f32 %v429_v37  ;;  %v319_v50 = vmul.f32 %v254_v44, %v254_v44  ;;  %v228_v51 = vsub.f32 %v69_v46, %v1001_v34  ;;  %v229_v52 = vsub.f32 %v69_v46, %v1003_v35 }
  0x86   :  { %724 = vpow2.f32 %v431_v38  ;;  %v320_v53 = vmul.f32 %v255_v47, %v255_v47  ;;  %v297_v55 = vmul.f32 %v232_v48, %v232_v48  ;;  %v298_v56 = vmul.f32 %v233_v49, %v233_v49 }
  0x87   :  { %726 = vpow2.f32 %v421_v39  ;;  %v385_v57 = vmul.f32 %v1007_v41, %v319_v50  ;;  %v293_v58 = vmul.f32 %v228_v51, %v228_v51  ;;  %v294_v59 = vmul.f32 %v229_v52, %v229_v52 }
  0x88   :  { %728 = vpow2.f32 %v423_v43  ;;  %v386_v60 = vmul.f32 %v1007_v41, %v320_v53  ;;  %v363_v61 = vmul.f32 %v1007_v41, %v297_v55  ;;  %v364_v62 = vmul.f32 %v1007_v41, %v298_v56 }
  0x89   :  { %v719_v63 = vpop.eup %718  ;;  %v477_v0 = vmul.f32 1.442695, %v385_v57  ;;  %v359_v1 = vmul.f32 %v1007_v41, %v293_v58  ;;  %v360_v2 = vmul.f32 %v1007_v41, %v294_v59 }
  0x8a   :  { %v721_v3 = vpop.eup %720  ;;  %v572_v4 = vmul.f32 %v719_v63, %v1015_v54  ;;  %v479_v5 = vmul.f32 1.442695, %v386_v60  ;;  %v433_v6 = vmul.f32 1.442695, %v363_v61  ;;  %v435_v7 = vmul.f32 1.442695, %v364_v62  ;;  %v149_v8 = vpop.permute.xlu2 %148 }
  0x8b   :  { %v723_v9 = vpop.eup %722  ;;  %v573_v10 = vmul.f32 %v721_v3, %v1015_v54  ;;  %730 = vpow2.f32 %v477_v0  ;;  %v425_v11 = vmul.f32 1.442695, %v359_v1  ;;  %v427_v12 = vmul.f32 1.442695, %v360_v2  ;;  %v99_v13 = vpop.permute.xlu1 %98 }
  0x8c   :  { %v94_v14 = vpop.permute.xlu0 %93  ;;  %v725_v15 = vpop.eup %724  ;;  %636 = vst [vmem:[#allocation5 + $0xb0] sm:$0xff] %v572_v4  ;;  %v554_v16 = vmul.f32 %v723_v9, %v1015_v54  ;;  %732 = vpow2.f32 %v479_v5  ;;  %v260_v17 = vsub.f32 %v149_v8, %v1001_v34  ;;  %v261_v18 = vsub.f32 %v149_v8, %v1003_v35 }
  0x8d   :  { %v727_v19 = vpop.eup %726  ;;  %637 = vst [vmem:[#allocation5 + $0xb8] sm:$0xff] %v573_v10  ;;  %v555_v20 = vmul.f32 %v725_v15, %v1015_v54  ;;  %734 = vpow2.f32 %v433_v6  ;;  %v240_v21 = vsub.f32 %v99_v13, %v1001_v34  ;;  %v241_v22 = vsub.f32 %v99_v13, %v1003_v35 }
  0x8e   :  { %v729_v23 = vpop.eup %728  ;;  %618 = vst [vmem:[#allocation5 + $0x20] sm:$0xff] %v554_v16  ;;  %v550_v24 = vmul.f32 %v727_v19, %v1015_v54  ;;  %736 = vpow2.f32 %v435_v7  ;;  %v325_v25 = vmul.f32 %v260_v17, %v260_v17  ;;  %v326_v26 = vmul.f32 %v261_v18, %v261_v18 }
  0x8f   :  { %619 = vst [vmem:[#allocation5 + $0x28] sm:$0xff] %v555_v20  ;;  %v551_v27 = vmul.f32 %v729_v23, %v1015_v54  ;;  %738 = vpow2.f32 %v425_v11  ;;  %v305_v28 = vmul.f32 %v240_v21, %v240_v21  ;;  %v306_v29 = vmul.f32 %v241_v22, %v241_v22 }
  0x90   :  { %614 = vst [vmem:[#allocation5] sm:$0xff] %v550_v24  ;;  %740 = vpow2.f32 %v427_v12  ;;  %v391_v30 = vmul.f32 %v1007_v41, %v325_v25  ;;  %v392_v31 = vmul.f32 %v1007_v41, %v326_v26  ;;  %v238_v32 = vsub.f32 %v94_v14, %v1001_v34 }
  0x91   :  { %v731_v33 = vpop.eup %730  ;;  %615 = vst [vmem:[#allocation5 + $0x8] sm:$0xff] %v551_v27  ;;  %v371_v36 = vmul.f32 %v1007_v41, %v305_v28  ;;  %v372_v37 = vmul.f32 %v1007_v41, %v306_v29  ;;  %v239_v38 = vsub.f32 %v94_v14, %v1003_v35 }
  0x92   :  { %v733_v39 = vpop.eup %732  ;;  %v578_v40 = vmul.f32 %v731_v33, %v1015_v54  ;;  %v489_v42 = vmul.f32 1.442695, %v391_v30  ;;  %v491_v43 = vmul.f32 1.442695, %v392_v31  ;;  %v303_v44 = vmul.f32 %v238_v32, %v238_v32  ;;  %v164_v45 = vpop.permute.xlu2 %163 }
  0x93   :  { %v735_v46 = vpop.eup %734  ;;  %v579_v47 = vmul.f32 %v733_v39, %v1015_v54  ;;  %v449_v48 = vmul.f32 1.442695, %v371_v36  ;;  %v451_v49 = vmul.f32 1.442695, %v372_v37  ;;  %v304_v50 = vmul.f32 %v239_v38, %v239_v38  ;;  %v114_v51 = vpop.permute.xlu1 %113 }
  0x94   :  { %v109_v52 = vpop.permute.xlu0 %108  ;;  %v737_v53 = vpop.eup %736  ;;  %642 = vst [vmem:[#allocation5 + $0xe0] sm:$0xff] %v578_v40  ;;  %v556_v55 = vmul.f32 %v735_v46, %v1015_v54  ;;  %742 = vpow2.f32 %v489_v42  ;;  %v369_v56 = vmul.f32 %v1007_v41, %v303_v44  ;;  %v266_v57 = vsub.f32 %v164_v45, %v1001_v34 }
  0x95   :  { %v739_v58 = vpop.eup %738  ;;  %643 = vst [vmem:[#allocation5 + $0xe8] sm:$0xff] %v579_v47  ;;  %v557_v59 = vmul.f32 %v737_v53, %v1015_v54  ;;  %744 = vpow2.f32 %v491_v43  ;;  %v370_v60 = vmul.f32 %v1007_v41, %v304_v50  ;;  %v267_v61 = vsub.f32 %v164_v45, %v1003_v35 }
  0x96   :  { %v741_v62 = vpop.eup %740  ;;  %620 = vst [vmem:[#allocation5 + $0x30] sm:$0xff] %v556_v55  ;;  %v552_v63 = vmul.f32 %v739_v58, %v1015_v54  ;;  %746 = vpow2.f32 %v449_v48  ;;  %v445_v0 = vmul.f32 1.442695, %v369_v56  ;;  %v331_v1 = vmul.f32 %v266_v57, %v266_v57 }
  0x97   :  { %621 = vst [vmem:[#allocation5 + $0x38] sm:$0xff] %v557_v59  ;;  %v553_v2 = vmul.f32 %v741_v62, %v1015_v54  ;;  %748 = vpow2.f32 %v451_v49  ;;  %v447_v3 = vmul.f32 1.442695, %v370_v60  ;;  %v332_v4 = vmul.f32 %v267_v61, %v267_v61 }
  0x98   :  { %616 = vst [vmem:[#allocation5 + $0x10] sm:$0xff] %v552_v63  ;;  %750 = vpow2.f32 %v445_v0  ;;  %v397_v5 = vmul.f32 %v1007_v41, %v331_v1  ;;  %v246_v6 = vsub.f32 %v114_v51, %v1001_v34  ;;  %v247_v7 = vsub.f32 %v114_v51, %v1003_v35 }
  0x99   :  { %617 = vst [vmem:[#allocation5 + $0x18] sm:$0xff] %v553_v2  ;;  %752 = vpow2.f32 %v447_v3  ;;  %v398_v8 = vmul.f32 %v1007_v41, %v332_v4  ;;  %v244_v9 = vsub.f32 %v109_v52, %v1001_v34  ;;  %v245_v10 = vsub.f32 %v109_v52, %v1003_v35 }
  0x9a   :  { %v743_v11 = vpop.eup %742  ;;  %v501_v12 = vmul.f32 1.442695, %v397_v5  ;;  %v311_v13 = vmul.f32 %v246_v6, %v246_v6  ;;  %v312_v14 = vmul.f32 %v247_v7, %v247_v7  ;;  %v179_v15 = vpop.permute.xlu2 %178 }
  0x9b   :  { %v745_v16 = vpop.eup %744  ;;  %v584_v17 = vmul.f32 %v743_v11, %v1015_v54  ;;  %v503_v18 = vmul.f32 1.442695, %v398_v8  ;;  %v309_v19 = vmul.f32 %v244_v9, %v244_v9  ;;  %v310_v20 = vmul.f32 %v245_v10, %v245_v10  ;;  %v129_v21 = vpop.permute.xlu1 %128 }
  0x9c   :  { %v124_v22 = vpop.permute.xlu0 %123  ;;  %v747_v23 = vpop.eup %746  ;;  %v585_v24 = vmul.f32 %v745_v16, %v1015_v54  ;;  %754 = vpow2.f32 %v501_v12  ;;  %v377_v25 = vmul.f32 %v1007_v41, %v311_v13  ;;  %v378_v26 = vmul.f32 %v1007_v41, %v312_v14 }
  0x9d   :  { %v749_v27 = vpop.eup %748  ;;  %648 = vst [vmem:[#allocation5 + $0x110] sm:$0xff] %v584_v17  ;;  %v564_v28 = vmul.f32 %v747_v23, %v1015_v54  ;;  %756 = vpow2.f32 %v503_v18  ;;  %v375_v29 = vmul.f32 %v1007_v41, %v309_v19  ;;  %v376_v30 = vmul.f32 %v1007_v41, %v310_v20 }
  0x9e   :  { %v751_v31 = vpop.eup %750  ;;  %649 = vst [vmem:[#allocation5 + $0x118] sm:$0xff] %v585_v24  ;;  %v565_v32 = vmul.f32 %v749_v27, %v1015_v54  ;;  %v461_v33 = vmul.f32 1.442695, %v377_v25  ;;  %v463_v36 = vmul.f32 1.442695, %v378_v26  ;;  %v272_v37 = vsub.f32 %v179_v15, %v1001_v34 }
  0x9f   :  { %v753_v38 = vpop.eup %752  ;;  %628 = vst [vmem:[#allocation5 + $0x70] sm:$0xff] %v564_v28  ;;  %v562_v39 = vmul.f32 %v751_v31, %v1015_v54  ;;  %v457_v40 = vmul.f32 1.442695, %v375_v29  ;;  %v459_v42 = vmul.f32 1.442695, %v376_v30  ;;  %v273_v43 = vsub.f32 %v179_v15, %v1003_v35 }
  0xa0   :  { %629 = vst [vmem:[#allocation5 + $0x78] sm:$0xff] %v565_v32  ;;  %v563_v44 = vmul.f32 %v753_v38, %v1015_v54  ;;  %758 = vpow2.f32 %v461_v33  ;;  %v337_v45 = vmul.f32 %v272_v37, %v272_v37  ;;  %v252_v46 = vsub.f32 %v129_v21, %v1001_v34 }
  0xa1   :  { %626 = vst [vmem:[#allocation5 + $0x60] sm:$0xff] %v562_v39  ;;  %760 = vpow2.f32 %v463_v36  ;;  %v338_v47 = vmul.f32 %v273_v43, %v273_v43  ;;  %v253_v48 = vsub.f32 %v129_v21, %v1003_v35  ;;  %v250_v49 = vsub.f32 %v124_v22, %v1001_v34 }
  0xa2   :  { %v755_v50 = vpop.eup %754  ;;  %627 = vst [vmem:[#allocation5 + $0x68] sm:$0xff] %v563_v44  ;;  %762 = vpow2.f32 %v457_v40  ;;  %v403_v51 = vmul.f32 %v1007_v41, %v337_v45  ;;  %v317_v52 = vmul.f32 %v252_v46, %v252_v46  ;;  %v251_v53 = vsub.f32 %v124_v22, %v1003_v35  ;;  %v194_v55 = vpop.permute.xlu2 %193 }
  0xa3   :  { %v757_v56 = vpop.eup %756  ;;  %v590_v57 = vmul.f32 %v755_v50, %v1015_v54  ;;  %764 = vpow2.f32 %v459_v42  ;;  %v404_v58 = vmul.f32 %v1007_v41, %v338_v47  ;;  %v318_v59 = vmul.f32 %v253_v48, %v253_v48  ;;  %v144_v60 = vpop.permute.xlu1 %143 }
  0xa4   :  { %v139_v61 = vpop.permute.xlu0 %138  ;;  %v591_v62 = vmul.f32 %v757_v56, %v1015_v54  ;;  %v513_v63 = vmul.f32 1.442695, %v403_v51  ;;  %v383_v0 = vmul.f32 %v1007_v41, %v317_v52  ;;  %v315_v1 = vmul.f32 %v250_v49, %v250_v49 }
  0xa5   :  { %654 = vst [vmem:[#allocation5 + $0x140] sm:$0xff] %v590_v57  ;;  %v515_v2 = vmul.f32 1.442695, %v404_v58  ;;  %v384_v3 = vmul.f32 %v1007_v41, %v318_v59  ;;  %v316_v4 = vmul.f32 %v251_v53, %v251_v53  ;;  %v278_v5 = vsub.f32 %v194_v55, %v1001_v34 }
  0xa6   :  { %v759_v6 = vpop.eup %758  ;;  %655 = vst [vmem:[#allocation5 + $0x148] sm:$0xff] %v591_v62  ;;  %766 = vpow2.f32 %v513_v63  ;;  %v473_v7 = vmul.f32 1.442695, %v383_v0  ;;  %v381_v8 = vmul.f32 %v1007_v41, %v315_v1  ;;  %v279_v9 = vsub.f32 %v194_v55, %v1003_v35 }
  0xa7   :  { %v761_v10 = vpop.eup %760  ;;  %v570_v11 = vmul.f32 %v759_v6, %v1015_v54  ;;  %768 = vpow2.f32 %v515_v2  ;;  %v475_v12 = vmul.f32 1.442695, %v384_v3  ;;  %v382_v13 = vmul.f32 %v1007_v41, %v316_v4 }
  0xa8   :  { %v763_v14 = vpop.eup %762  ;;  %v571_v15 = vmul.f32 %v761_v10, %v1015_v54  ;;  %770 = vpow2.f32 %v473_v7  ;;  %v469_v16 = vmul.f32 1.442695, %v381_v8  ;;  %v343_v17 = vmul.f32 %v278_v5, %v278_v5 }
  0xa9   :  { %v765_v18 = vpop.eup %764  ;;  %634 = vst [vmem:[#allocation5 + $0xa0] sm:$0xff] %v570_v11  ;;  %v568_v19 = vmul.f32 %v763_v14, %v1015_v54  ;;  %772 = vpow2.f32 %v475_v12  ;;  %v471_v20 = vmul.f32 1.442695, %v382_v13  ;;  %v344_v21 = vmul.f32 %v279_v9, %v279_v9 }
  0xaa   :  { %635 = vst [vmem:[#allocation5 + $0xa8] sm:$0xff] %v571_v15  ;;  %v569_v22 = vmul.f32 %v765_v18, %v1015_v54  ;;  %774 = vpow2.f32 %v469_v16  ;;  %v409_v23 = vmul.f32 %v1007_v41, %v343_v17  ;;  %v258_v24 = vsub.f32 %v144_v60, %v1001_v34  ;;  %v209_v25 = vpop.permute.xlu2 %208 }
  0xab   :  { %632 = vst [vmem:[#allocation5 + $0x90] sm:$0xff] %v568_v19  ;;  %776 = vpow2.f32 %v471_v20  ;;  %v410_v26 = vmul.f32 %v1007_v41, %v344_v21  ;;  %v259_v27 = vsub.f32 %v144_v60, %v1003_v35  ;;  %v256_v28 = vsub.f32 %v139_v61, %v1001_v34  ;;  %v159_v29 = vpop.permute.xlu1 %158 }
  0xac   :  { %v154_v30 = vpop.permute.xlu0 %153  ;;  %v767_v31 = vpop.eup %766  ;;  %633 = vst [vmem:[#allocation5 + $0x98] sm:$0xff] %v569_v22  ;;  %v525_v32 = vmul.f32 1.442695, %v409_v23  ;;  %v323_v33 = vmul.f32 %v258_v24, %v258_v24  ;;  %v257_v36 = vsub.f32 %v139_v61, %v1003_v35  ;;  %v284_v37 = vsub.f32 %v209_v25, %v1001_v34 }
  0xad   :  { %v769_v38 = vpop.eup %768  ;;  %v596_v39 = vmul.f32 %v767_v31, %v1015_v54  ;;  %v527_v40 = vmul.f32 1.442695, %v410_v26  ;;  %v324_v42 = vmul.f32 %v259_v27, %v259_v27  ;;  %v321_v43 = vmul.f32 %v256_v28, %v256_v28 }
  0xae   :  { %v771_v44 = vpop.eup %770  ;;  %v597_v45 = vmul.f32 %v769_v38, %v1015_v54  ;;  %778 = vpow2.f32 %v525_v32  ;;  %v389_v46 = vmul.f32 %v1007_v41, %v323_v33  ;;  %v322_v47 = vmul.f32 %v257_v36, %v257_v36 }
  0xaf   :  { %v773_v48 = vpop.eup %772  ;;  %660 = vst [vmem:[#allocation5 + $0x170] sm:$0xff] %v596_v39  ;;  %v576_v49 = vmul.f32 %v771_v44, %v1015_v54  ;;  %780 = vpow2.f32 %v527_v40  ;;  %v390_v50 = vmul.f32 %v1007_v41, %v324_v42  ;;  %v387_v51 = vmul.f32 %v1007_v41, %v321_v43 }
  0xb0   :  { %v775_v52 = vpop.eup %774  ;;  %661 = vst [vmem:[#allocation5 + $0x178] sm:$0xff] %v597_v45  ;;  %v577_v53 = vmul.f32 %v773_v48, %v1015_v54  ;;  %v485_v55 = vmul.f32 1.442695, %v389_v46  ;;  %v388_v56 = vmul.f32 %v1007_v41, %v322_v47  ;;  %v285_v57 = vsub.f32 %v209_v25, %v1003_v35 }
  0xb1   :  { %v777_v58 = vpop.eup %776  ;;  %640 = vst [vmem:[#allocation5 + $0xd0] sm:$0xff] %v576_v49  ;;  %v574_v59 = vmul.f32 %v775_v52, %v1015_v54  ;;  %v487_v60 = vmul.f32 1.442695, %v390_v50  ;;  %v481_v61 = vmul.f32 1.442695, %v387_v51  ;;  %v349_v62 = vmul.f32 %v284_v37, %v284_v37 }
  0xb2   :  { %641 = vst [vmem:[#allocation5 + $0xd8] sm:$0xff] %v577_v53  ;;  %v575_v63 = vmul.f32 %v777_v58, %v1015_v54  ;;  %782 = vpow2.f32 %v485_v55  ;;  %v483_v0 = vmul.f32 1.442695, %v388_v56  ;;  %v350_v1 = vmul.f32 %v285_v57, %v285_v57 }
  0xb3   :  { %638 = vst [vmem:[#allocation5 + $0xc0] sm:$0xff] %v574_v59  ;;  %784 = vpow2.f32 %v487_v60  ;;  %v415_v2 = vmul.f32 %v1007_v41, %v349_v62  ;;  %v264_v3 = vsub.f32 %v159_v29, %v1001_v34  ;;  %v265_v4 = vsub.f32 %v159_v29, %v1003_v35  ;;  %v174_v5 = vpop.permute.xlu1 %173 }
  0xb4   :  { %v169_v6 = vpop.permute.xlu0 %168  ;;  %v779_v7 = vpop.eup %778  ;;  %639 = vst [vmem:[#allocation5 + $0xc8] sm:$0xff] %v575_v63  ;;  %786 = vpow2.f32 %v481_v61  ;;  %v416_v8 = vmul.f32 %v1007_v41, %v350_v1  ;;  %v262_v9 = vsub.f32 %v154_v30, %v1001_v34  ;;  %v263_v10 = vsub.f32 %v154_v30, %v1003_v35 }
  0xb5   :  { %v781_v11 = vpop.eup %780  ;;  %v602_v12 = vmul.f32 %v779_v7, %v1015_v54  ;;  %788 = vpow2.f32 %v483_v0  ;;  %v537_v13 = vmul.f32 1.442695, %v415_v2  ;;  %v329_v14 = vmul.f32 %v264_v3, %v264_v3 }
  0xb6   :  { %v603_v15 = vmul.f32 %v781_v11, %v1015_v54  ;;  %v539_v16 = vmul.f32 1.442695, %v416_v8  ;;  %v330_v17 = vmul.f32 %v265_v4, %v265_v4  ;;  %v327_v18 = vmul.f32 %v262_v9, %v262_v9 }
  0xb7   :  { %666 = vst [vmem:[#allocation5 + $0x1a0] sm:$0xff] %v602_v12  ;;  %790 = vpow2.f32 %v537_v13  ;;  %v395_v19 = vmul.f32 %v1007_v41, %v329_v14  ;;  %v328_v20 = vmul.f32 %v263_v10, %v263_v10  ;;  %v270_v21 = vsub.f32 %v174_v5, %v1001_v34 }
  0xb8   :  { %v783_v22 = vpop.eup %782  ;;  %667 = vst [vmem:[#allocation5 + $0x1a8] sm:$0xff] %v603_v15  ;;  %792 = vpow2.f32 %v539_v16  ;;  %v396_v23 = vmul.f32 %v1007_v41, %v330_v17  ;;  %v393_v24 = vmul.f32 %v1007_v41, %v327_v18  ;;  %v271_v25 = vsub.f32 %v174_v5, %v1003_v35 }
  0xb9   :  { %v785_v26 = vpop.eup %784  ;;  %v582_v27 = vmul.f32 %v783_v22, %v1015_v54  ;;  %v497_v28 = vmul.f32 1.442695, %v395_v19  ;;  %v394_v29 = vmul.f32 %v1007_v41, %v328_v20  ;;  %v335_v30 = vmul.f32 %v270_v21, %v270_v21 }
  0xba   :  { %v787_v31 = vpop.eup %786  ;;  %v583_v32 = vmul.f32 %v785_v26, %v1015_v54  ;;  %v499_v33 = vmul.f32 1.442695, %v396_v23  ;;  %v493_v36 = vmul.f32 1.442695, %v393_v24  ;;  %v336_v37 = vmul.f32 %v271_v25, %v271_v25 }
  0xbb   :  { %v789_v38 = vpop.eup %788  ;;  %646 = vst [vmem:[#allocation5 + $0x100] sm:$0xff] %v582_v27  ;;  %v580_v39 = vmul.f32 %v787_v31, %v1015_v54  ;;  %794 = vpow2.f32 %v497_v28  ;;  %v495_v40 = vmul.f32 1.442695, %v394_v29  ;;  %v401_v42 = vmul.f32 %v1007_v41, %v335_v30  ;;  %v189_v43 = vpop.permute.xlu1 %188 }
  0xbc   :  { %v184_v44 = vpop.permute.xlu0 %183  ;;  %647 = vst [vmem:[#allocation5 + $0x108] sm:$0xff] %v583_v32  ;;  %v581_v45 = vmul.f32 %v789_v38, %v1015_v54  ;;  %796 = vpow2.f32 %v499_v33  ;;  %v402_v46 = vmul.f32 %v1007_v41, %v336_v37  ;;  %v268_v47 = vsub.f32 %v169_v6, %v1001_v34 }
  0xbd   :  { %v791_v48 = vpop.eup %790  ;;  %644 = vst [vmem:[#allocation5 + $0xf0] sm:$0xff] %v580_v39  ;;  %798 = vpow2.f32 %v493_v36  ;;  %v509_v49 = vmul.f32 1.442695, %v401_v42  ;;  %v269_v50 = vsub.f32 %v169_v6, %v1003_v35  ;;  %v276_v51 = vsub.f32 %v189_v43, %v1001_v34 }
  0xbe   :  { %v793_v52 = vpop.eup %792  ;;  %645 = vst [vmem:[#allocation5 + $0xf8] sm:$0xff] %v581_v45  ;;  %v608_v53 = vmul.f32 %v791_v48, %v1015_v54  ;;  %800 = vpow2.f32 %v495_v40  ;;  %v511_v55 = vmul.f32 1.442695, %v402_v46  ;;  %v333_v56 = vmul.f32 %v268_v47, %v268_v47 }
  0xbf   :  { %v609_v57 = vmul.f32 %v793_v52, %v1015_v54  ;;  %802 = vpow2.f32 %v509_v49  ;;  %v334_v58 = vmul.f32 %v269_v50, %v269_v50  ;;  %v277_v59 = vsub.f32 %v189_v43, %v1003_v35 }
  0xc0   :  { %672 = vst [vmem:[#allocation5 + $0x1d0] sm:$0xff] %v608_v53  ;;  %804 = vpow2.f32 %v511_v55  ;;  %v399_v60 = vmul.f32 %v1007_v41, %v333_v56  ;;  %v341_v61 = vmul.f32 %v276_v51, %v276_v51  ;;  %v274_v62 = vsub.f32 %v184_v44, %v1001_v34 }
  0xc1   :  { %v795_v63 = vpop.eup %794  ;;  %673 = vst [vmem:[#allocation5 + $0x1d8] sm:$0xff] %v609_v57  ;;  %v400_v0 = vmul.f32 %v1007_v41, %v334_v58  ;;  %v342_v1 = vmul.f32 %v277_v59, %v277_v59  ;;  %v275_v2 = vsub.f32 %v184_v44, %v1003_v35 }
  0xc2   :  { %v797_v3 = vpop.eup %796  ;;  %v588_v4 = vmul.f32 %v795_v63, %v1015_v54  ;;  %v505_v5 = vmul.f32 1.442695, %v399_v60  ;;  %v407_v6 = vmul.f32 %v1007_v41, %v341_v61  ;;  %v339_v7 = vmul.f32 %v274_v62, %v274_v62 }
  0xc3   :  { %v799_v8 = vpop.eup %798  ;;  %v589_v9 = vmul.f32 %v797_v3, %v1015_v54  ;;  %v507_v10 = vmul.f32 1.442695, %v400_v0  ;;  %v408_v11 = vmul.f32 %v1007_v41, %v342_v1  ;;  %v340_v12 = vmul.f32 %v275_v2, %v275_v2  ;;  %v204_v13 = vpop.permute.xlu1 %203 }
  0xc4   :  { %v199_v14 = vpop.permute.xlu0 %198  ;;  %v801_v15 = vpop.eup %800  ;;  %652 = vst [vmem:[#allocation5 + $0x130] sm:$0xff] %v588_v4  ;;  %v586_v16 = vmul.f32 %v799_v8, %v1015_v54  ;;  %806 = vpow2.f32 %v505_v5  ;;  %v521_v17 = vmul.f32 1.442695, %v407_v6  ;;  %v405_v18 = vmul.f32 %v1007_v41, %v339_v7 }
  0xc5   :  { %v803_v19 = vpop.eup %802  ;;  %653 = vst [vmem:[#allocation5 + $0x138] sm:$0xff] %v589_v9  ;;  %v587_v20 = vmul.f32 %v801_v15, %v1015_v54  ;;  %808 = vpow2.f32 %v507_v10  ;;  %v523_v21 = vmul.f32 1.442695, %v408_v11  ;;  %v406_v22 = vmul.f32 %v1007_v41, %v340_v12 }
  0xc6   :  { %v805_v23 = vpop.eup %804  ;;  %650 = vst [vmem:[#allocation5 + $0x120] sm:$0xff] %v586_v16  ;;  %v594_v24 = vmul.f32 %v803_v19, %v1015_v54  ;;  %810 = vpow2.f32 %v521_v17  ;;  %v517_v25 = vmul.f32 1.442695, %v405_v18  ;;  %v282_v26 = vsub.f32 %v204_v13, %v1001_v34 }
  0xc7   :  { %651 = vst [vmem:[#allocation5 + $0x128] sm:$0xff] %v587_v20  ;;  %v595_v27 = vmul.f32 %v805_v23, %v1015_v54  ;;  %812 = vpow2.f32 %v523_v21  ;;  %v519_v28 = vmul.f32 1.442695, %v406_v22  ;;  %v283_v29 = vsub.f32 %v204_v13, %v1003_v35 }
  0xc8   :  { %658 = vst [vmem:[#allocation5 + $0x160] sm:$0xff] %v594_v24  ;;  %814 = vpow2.f32 %v517_v25  ;;  %v347_v30 = vmul.f32 %v282_v26, %v282_v26  ;;  %v280_v31 = vsub.f32 %v199_v14, %v1001_v34  ;;  %v281_v32 = vsub.f32 %v199_v14, %v1003_v35 }
  0xc9   :  { %659 = vst [vmem:[#allocation5 + $0x168] sm:$0xff] %v595_v27  ;;  %816 = vpow2.f32 %v519_v28  ;;  %v348_v33 = vmul.f32 %v283_v29, %v283_v29 }
  0xca   :  { %v807_v36 = vpop.eup %806  ;;  %v413_v37 = vmul.f32 %v1007_v41, %v347_v30  ;;  %v345_v38 = vmul.f32 %v280_v31, %v280_v31  ;;  %v346_v39 = vmul.f32 %v281_v32, %v281_v32 }
  0xcb   :  { %v809_v40 = vpop.eup %808  ;;  %v592_v42 = vmul.f32 %v807_v36, %v1015_v54  ;;  %v414_v43 = vmul.f32 %v1007_v41, %v348_v33  ;;  %v219_v44 = vpop.permute.xlu1 %218 }
  0xcc   :  { %v811_v45 = vpop.eup %810  ;;  %v593_v46 = vmul.f32 %v809_v40, %v1015_v54  ;;  %v533_v47 = vmul.f32 1.442695, %v413_v37  ;;  %v411_v48 = vmul.f32 %v1007_v41, %v345_v38  ;;  %v412_v49 = vmul.f32 %v1007_v41, %v346_v39  ;;  %v214_v56 = vpop.permute.xlu0 %213 }
  0xcd   :  { %v813_v50 = vpop.eup %812  ;;  %656 = vst [vmem:[#allocation5 + $0x150] sm:$0xff] %v592_v42  ;;  %v600_v51 = vmul.f32 %v811_v45, %v1015_v54  ;;  %v535_v52 = vmul.f32 1.442695, %v414_v43  ;;  %v288_v53 = vsub.f32 %v219_v44, %v1001_v34  ;;  %v289_v55 = vsub.f32 %v219_v44, %v1003_v35 }
  0xce   :  { %v815_v57 = vpop.eup %814  ;;  %657 = vst [vmem:[#allocation5 + $0x158] sm:$0xff] %v593_v46  ;;  %v601_v58 = vmul.f32 %v813_v50, %v1015_v54  ;;  %818 = vpow2.f32 %v533_v47  ;;  %v529_v59 = vmul.f32 1.442695, %v411_v48  ;;  %v531_v60 = vmul.f32 1.442695, %v412_v49 }
  0xcf   :  { %v817_v61 = vpop.eup %816  ;;  %664 = vst [vmem:[#allocation5 + $0x190] sm:$0xff] %v600_v51  ;;  %v598_v62 = vmul.f32 %v815_v57, %v1015_v54  ;;  %820 = vpow2.f32 %v535_v52  ;;  %v353_v63 = vmul.f32 %v288_v53, %v288_v53  ;;  %v354_v0 = vmul.f32 %v289_v55, %v289_v55 }
  0xd0   :  { %665 = vst [vmem:[#allocation5 + $0x198] sm:$0xff] %v601_v58  ;;  %v599_v1 = vmul.f32 %v817_v61, %v1015_v54  ;;  %822 = vpow2.f32 %v529_v59  ;;  %v286_v2 = vsub.f32 %v214_v56, %v1001_v34  ;;  %v287_v3 = vsub.f32 %v214_v56, %v1003_v35 }
  0xd1   :  { %662 = vst [vmem:[#allocation5 + $0x180] sm:$0xff] %v598_v62  ;;  %824 = vpow2.f32 %v531_v60  ;;  %v419_v4 = vmul.f32 %v1007_v41, %v353_v63  ;;  %v420_v5 = vmul.f32 %v1007_v41, %v354_v0 }
  0xd2   :  { %663 = vst [vmem:[#allocation5 + $0x188] sm:$0xff] %v599_v1  ;;  %v351_v6 = vmul.f32 %v286_v2, %v286_v2  ;;  %v352_v7 = vmul.f32 %v287_v3, %v287_v3 }
  0xd3   :  { %v545_v8 = vmul.f32 1.442695, %v419_v4  ;;  %v547_v9 = vmul.f32 1.442695, %v420_v5 }
  0xd4   :  { %v819_v10 = vpop.eup %818  ;;  %v417_v11 = vmul.f32 %v1007_v41, %v351_v6  ;;  %v418_v12 = vmul.f32 %v1007_v41, %v352_v7 }
  0xd5   :  { %v821_v13 = vpop.eup %820  ;;  %v606_v34 = vmul.f32 %v819_v10, %v1015_v54  ;;  %826 = vpow2.f32 %v545_v8 }
  0xd6   :  { %v823_v35 = vpop.eup %822  ;;  %v607_v14 = vmul.f32 %v821_v13, %v1015_v54  ;;  %828 = vpow2.f32 %v547_v9  ;;  %v541_v15 = vmul.f32 1.442695, %v417_v11  ;;  %v543_v16 = vmul.f32 1.442695, %v418_v12 }
  0xd7   :  { %v825_v17 = vpop.eup %824  ;;  %670 = vst [vmem:[#allocation5 + $0x1c0] sm:$0xff] %v606_v34  ;;  %v604_v18 = vmul.f32 %v823_v35, %v1015_v54 }
  0xd8   :  { %671 = vst [vmem:[#allocation5 + $0x1c8] sm:$0xff] %v607_v14  ;;  %v605_v19 = vmul.f32 %v825_v17, %v1015_v54  ;;  %830 = vpow2.f32 %v541_v15 }
  0xd9   :  { %668 = vst [vmem:[#allocation5 + $0x1b0] sm:$0xff] %v604_v18  ;;  %832 = vpow2.f32 %v543_v16 }
  0xda   :  { %669 = vst [vmem:[#allocation5 + $0x1b8] sm:$0xff] %v605_v19 }
  0xdb   :  { %v827_v41 = vpop.eup %826 }
  0xdc   :  { %v829_v20 = vpop.eup %828  ;;  %v612_v21 = vmul.f32 %v827_v41, %v1015_v54 }
  0xdd   :  { %v613_v22 = vmul.f32 %v829_v20, %v1015_v54 }
  0xde   :  { %v831_v23 = vpop.eup %830  ;;  %676 = vst [vmem:[#allocation5 + $0x1f0] sm:$0xff] %v612_v21 }
  0xdf   :  { %v833_v24 = vpop.eup %832  ;;  %677 = vst [vmem:[#allocation5 + $0x1f8] sm:$0xff] %v613_v22  ;;  %v610_v25 = vmul.f32 %v831_v23, %v1015_v54 }
  0xe0   :  { %v611_v26 = vmul.f32 %v833_v24, %v1015_v54 }
  0xe1   :  { %674 = vst [vmem:[#allocation5 + $0x1e0] sm:$0xff] %v610_v25 }
  0xe2   :  { %675 = vst [vmem:[#allocation5 + $0x1e8] sm:$0xff] %v611_v26 }
  0xe3   :  { %690 = dma.vmem_to_hbm [thread:$0]  %s683_s26, 8192, %s685_s29, [#allocation3], %s877_s30, %s877_s30, %s878_s4  }
  0xe4   :  { %872 = dma.done.wait [#allocation3], 8192  }
  0xe5   :  { %873 = vsyncadd [#allocation3], 4294959104 }
  0xe6   :  { %695 = vsyncpa [#allocation3], 1 }
  0xe7   :  { %696 = vsyncpa [#allocation4], 1 }

</bundles_post_ra>
